<compile_context>
chip_gen: v7x
topology: tpu7x:2x2x1
jax: 0.10.0
libtpu: 0.0.40
codegen_flags: <defaults>
</compile_context>

<pallas_src>
import functools

import jax
import jax.numpy as jnp
from jax.experimental import pallas as pl
from jax.experimental.pallas import tpu as pltpu

LANES = 128            # vreg lane width
SUBLANES = 8           # f32 vreg sublane count
MAX_BLOCK_ROWS = 4096  # (4096,128) f32 block = 2 MiB; 3 inputs x 2 bufs = 12 MiB
NUM_CORES = 2          # parallel grid axis (both v7x TCs; near-free on 1-core chips)


def _nll_kernel(gt_ref, mean_ref, logvar_ref, out_ref, *,
                n_valid, block_rows, blocks_per_core):
    c = pl.program_id(0)   # "parallel" core axis
    i = pl.program_id(1)   # sequential block axis (reduction)

    # Zero the per-core (8,128) accumulator (held in the output block) once.
    @pl.when(i == 0)
    def _():
        out_ref[...] = jnp.zeros_like(out_ref)

    # Cast in-kernel so bf16 (or other) inputs are streamed at native width.
    lv = logvar_ref[...].astype(jnp.float32)
    diff = gt_ref[...].astype(jnp.float32) - mean_ref[...].astype(jnp.float32)
    # 0.5 is factored out of the hot loop and applied once in the wrapper.
    val = jnp.exp(-lv) * diff * diff + lv

    # Mask out (a) host zero-padding, (b) the ragged tail of the last block,
    # (c) duplicated clamped blocks assigned past the end of the grid split.
    blk = c * blocks_per_core + i   # logical (unclamped) block id
    row = jax.lax.broadcasted_iota(jnp.int32, (block_rows, LANES), 0)
    col = jax.lax.broadcasted_iota(jnp.int32, (block_rows, LANES), 1)
    idx = (blk * block_rows + row) * LANES + col
    val = jnp.where(idx < n_valid, val, 0.0)

    # Pure-VPU vreg-wise fold into the (8,128) accumulator (no per-step XLU).
    out_ref[...] += val.reshape(-1, SUBLANES, LANES).sum(axis=0)


def aleatoric_loss(gt, pred_mean, logvar):
    """NLL regression loss; returns a float32 scalar (matches torch.sum)."""
    gt = jnp.asarray(gt)
    pred_mean = jnp.asarray(pred_mean)
    logvar = jnp.asarray(logvar)

    n = int(gt.size)
    flats = [x.reshape(-1) for x in (gt, pred_mean, logvar)]

    # Minimal padding: only up to one (8,128) tile (<=1023 elems), only if
    # needed. Large-block raggedness is handled by in-kernel masking rather
    # than materializing full-size padded copies in HBM.
    tile = SUBLANES * LANES
    pad = (-n) % tile
    if pad:
        flats = [jnp.pad(x, (0, pad)) for x in flats]
    rows = (n + pad) // LANES

    block_rows = min(MAX_BLOCK_ROWS, rows)          # rows is a multiple of 8
    num_blocks = (rows + block_rows - 1) // block_rows
    blocks_per_core = (num_blocks + NUM_CORES - 1) // NUM_CORES

    arrs = [x.reshape(rows, LANES) for x in flats]  # contiguous reshape: free

    def in_map(c, i):
        # Clamp so the DMA never reads past the array; duplicated blocks are
        # fully masked out inside the kernel (logical index >= n).
        return (jnp.minimum(c * blocks_per_core + i, num_blocks - 1), 0)

    in_spec = pl.BlockSpec((block_rows, LANES), in_map)
    kernel = functools.partial(
        _nll_kernel,
        n_valid=n,
        block_rows=block_rows,
        blocks_per_core=blocks_per_core,
    )

    partials = pl.pallas_call(
        kernel,
        out_shape=jax.ShapeDtypeStruct((NUM_CORES * SUBLANES, LANES), jnp.float32),
        grid_spec=pltpu.PrefetchScalarGridSpec(
            num_scalar_prefetch=0,
            grid=(NUM_CORES, blocks_per_core),
            in_specs=[in_spec, in_spec, in_spec],
            out_specs=pl.BlockSpec((SUBLANES, LANES), lambda c, i: (c, 0)),
        ),
        compiler_params=pltpu.CompilerParams(
            dimension_semantics=("parallel", "arbitrary"),
        ),
    )(*arrs)

    # One final cross-lane/sublane reduce on a tiny array + the factored 0.5.
    return 0.5 * jnp.sum(partials)


if __name__ == "__main__":
    key = jax.random.PRNGKey(0)
    k1, k2, k3 = jax.random.split(key, 3)
    shape = (2, 4, 16, 16)  # NCHW-style example input

    gt = jax.random.normal(k1, shape, dtype=jnp.float32)
    pred_mean = jax.random.normal(k2, shape, dtype=jnp.float32)
    logvar = 0.1 * jax.random.normal(k3, shape, dtype=jnp.float32)

    loss = aleatoric_loss(gt, pred_mean, logvar)
    loss = jax.block_until_ready(loss)

    # Pure-JAX reference check (summation order differs -> tolerance compare).
    ref = jnp.sum(0.5 * jnp.exp(-logvar) * (gt - pred_mean) ** 2 + 0.5 * logvar)
    assert jnp.allclose(loss, ref, rtol=1e-5, atol=1e-5), (loss, ref)

    print("KERNEL_OK")
</pallas_src>

<mosaic_0001>
module attributes {stable_mosaic.version = 11 : i64} {
  func.func @_nll_kernel(%arg0: i32, %arg1: i32, %arg2: memref<16x128xf32, #tpu.memory_space<vmem>>, %arg3: memref<16x128xf32, #tpu.memory_space<vmem>>, %arg4: memref<16x128xf32, #tpu.memory_space<vmem>>, %arg5: memref<8x128xf32, #tpu.memory_space<vmem>>) attributes {dimension_semantics = [#tpu.dimension_semantics<parallel>, #tpu.dimension_semantics<arbitrary>], iteration_bounds = array<i64: 2, 1>, scalar_prefetch = 0 : i64, scratch_operands = 0 : i64, tpu.core_type = #tpu.core_type<tc>, window_params = [{transform_indices = @transform_0, window_bounds = array<i64: 16, 128>}, {transform_indices = @transform_1, window_bounds = array<i64: 16, 128>}, {transform_indices = @transform_2, window_bounds = array<i64: 16, 128>}, {transform_indices = @transform_3, window_bounds = array<i64: 8, 128>}]} {
    %c0_i32 = arith.constant 0 : i32
    %0 = arith.cmpi eq, %arg1, %c0_i32 : i32
    %1 = arith.extui %0 : i1 to i32
    %c0_i32_0 = arith.constant 0 : i32
    %2 = arith.cmpi ne, %1, %c0_i32_0 : i32
    scf.if %2 {
      %cst_12 = arith.constant 0.000000e+00 : f32
      %32 = vector.broadcast %cst_12 : f32 to vector<8x128xf32>
      %c0_13 = arith.constant 0 : index
      %c0_14 = arith.constant 0 : index
      %33 = vector.load %arg5[%c0_13, %c0_14] : memref<8x128xf32, #tpu.memory_space<vmem>>, vector<8x128xf32>
      tpu.vector_store %arg5[%c0_13, %c0_14], %32 {strides = array<i32>} : memref<8x128xf32, #tpu.memory_space<vmem>>, vector<8x128xf32>,
    } else {
    }
    %c0 = arith.constant 0 : index
    %c0_1 = arith.constant 0 : index
    %3 = vector.load %arg4[%c0, %c0_1] : memref<16x128xf32, #tpu.memory_space<vmem>>, vector<16x128xf32>
    %c0_2 = arith.constant 0 : index
    %c0_3 = arith.constant 0 : index
    %4 = vector.load %arg2[%c0_2, %c0_3] : memref<16x128xf32, #tpu.memory_space<vmem>>, vector<16x128xf32>
    %c0_4 = arith.constant 0 : index
    %c0_5 = arith.constant 0 : index
    %5 = vector.load %arg3[%c0_4, %c0_5] : memref<16x128xf32, #tpu.memory_space<vmem>>, vector<16x128xf32>
    %6 = arith.subf %4, %5 : vector<16x128xf32>
    %cst = arith.constant 0.000000e+00 : f32
    %7 = vector.broadcast %cst : f32 to vector<16x128xf32>
    %8 = arith.subf %7, %3 : vector<16x128xf32>
    %9 = math.exp %8 : vector<16x128xf32>
    %10 = arith.mulf %9, %6 : vector<16x128xf32>
    %11 = arith.mulf %10, %6 : vector<16x128xf32>
    %12 = arith.addf %11, %3 : vector<16x128xf32>
    %c1_i32 = arith.constant 1 : i32
    %13 = arith.muli %arg0, %c1_i32 : i32
    %14 = arith.addi %13, %arg1 : i32
    %15 = tpu.iota {dimensions = array<i32: 0>} : vector<16x128xi32>
    %16 = tpu.iota {dimensions = array<i32: 1>} : vector<16x128xi32>
    %c16_i32 = arith.constant 16 : i32
    %17 = arith.muli %14, %c16_i32 : i32
    %18 = vector.broadcast %17 : i32 to vector<16x128xi32>
    %19 = arith.addi %18, %15 : vector<16x128xi32>
    %c128_i32 = arith.constant 128 : i32
    %20 = vector.broadcast %c128_i32 : i32 to vector<16x128xi32>
    %21 = arith.muli %19, %20 : vector<16x128xi32>
    %22 = arith.addi %21, %16 : vector<16x128xi32>
    %c2048_i32 = arith.constant 2048 : i32
    %23 = vector.broadcast %c2048_i32 : i32 to vector<16x128xi32>
    %24 = arith.cmpi slt, %22, %23 : vector<16x128xi32>
    %cst_6 = arith.constant 0.000000e+00 : f32
    %25 = vector.broadcast %cst_6 : f32 to vector<16x128xf32>
    %26 = arith.select %24, %12, %25 : vector<16x128xi1>, vector<16x128xf32>
    %c0_7 = arith.constant 0 : index
    %c0_8 = arith.constant 0 : index
    %27 = vector.load %arg5[%c0_7, %c0_8] : memref<8x128xf32, #tpu.memory_space<vmem>>, vector<8x128xf32>
    %28 = vector.shape_cast %26 : vector<16x128xf32> to vector<2x8x128xf32>
    %cst_9 = arith.constant dense<0.000000e+00> : vector<8x128xf32>
    %29 = vector.multi_reduction <add>, %28, %cst_9 [0] : vector<2x8x128xf32> to vector<8x128xf32>
    %30 = arith.addf %27, %29 : vector<8x128xf32>
    %c0_10 = arith.constant 0 : index
    %c0_11 = arith.constant 0 : index
    %31 = vector.load %arg5[%c0_10, %c0_11] : memref<8x128xf32, #tpu.memory_space<vmem>>, vector<8x128xf32>
    tpu.vector_store %arg5[%c0_10, %c0_11], %30 {strides = array<i32>} : memref<8x128xf32, #tpu.memory_space<vmem>>, vector<8x128xf32>,
    return
  }
  func.func @transform_0(%arg0: i32, %arg1: i32) -> (i32, i32) {
    %c1_i32 = arith.constant 1 : i32
    %0 = arith.muli %arg0, %c1_i32 : i32
    %1 = arith.addi %0, %arg1 : i32
    %c0_i32 = arith.constant 0 : i32
    %2 = arith.minsi %1, %c0_i32 : i32
    %c0_i32_0 = arith.constant 0 : i32
    %c0_i32_1 = arith.constant 0 : i32
    return %2, %c0_i32_0 : i32, i32
  }
  func.func @transform_1(%arg0: i32, %arg1: i32) -> (i32, i32) {
    %c1_i32 = arith.constant 1 : i32
    %0 = arith.muli %arg0, %c1_i32 : i32
    %1 = arith.addi %0, %arg1 : i32
    %c0_i32 = arith.constant 0 : i32
    %2 = arith.minsi %1, %c0_i32 : i32
    %c0_i32_0 = arith.constant 0 : i32
    %c0_i32_1 = arith.constant 0 : i32
    return %2, %c0_i32_0 : i32, i32
  }
  func.func @transform_2(%arg0: i32, %arg1: i32) -> (i32, i32) {
    %c1_i32 = arith.constant 1 : i32
    %0 = arith.muli %arg0, %c1_i32 : i32
    %1 = arith.addi %0, %arg1 : i32
    %c0_i32 = arith.constant 0 : i32
    %2 = arith.minsi %1, %c0_i32 : i32
    %c0_i32_0 = arith.constant 0 : i32
    %c0_i32_1 = arith.constant 0 : i32
    return %2, %c0_i32_0 : i32, i32
  }
  func.func @transform_3(%arg0: i32, %arg1: i32) -> (i32, i32) {
    %c0_i32 = arith.constant 0 : i32
    %c0_i32_0 = arith.constant 0 : i32
    return %arg0, %c0_i32 : i32, i32
  }
}

</mosaic_0001>

<bundles_post_ra>
// kernel: tpu_custom_call.1
= control target key start
LH: loop header
LB: loop body
LE: loop exit
PB: predicated region body
PF: predicated region fallthrough
CT: control target
= control target key end

     0   :  { %s1103_s0 = inlined_call_operand.hbm [shape: f32[16,128], index: 0, kind: input, shape index: {}]   ;;  %s1104_s1 = inlined_call_operand.hbm [shape: f32[16,128], index: 1, kind: input, shape index: {}]   ;;  %s1105_s2 = inlined_call_operand.hbm [shape: f32[16,128], index: 2, kind: input, shape index: {}]   ;;  %s1106_s3 = inlined_call_operand.hbm [shape: f32[16,128], index: 3, kind: output, shape index: {}]  }
   0x1   :  { %1113 = sst [smem:[#allocation15_spill]] %s1104_s1 }
   0x2   :  { %8 = vsyncpa [#allocation3], 0 }
   0x3   :  { %10 = vsyncpa [#allocation3 + $0x1], 0 }
   0x4   :  { %11 = vsyncpa [#allocation6], 0 }
   0x5   :  { %13 = vsyncpa [#allocation6 + $0x1], 0 }
   0x6   :  { %14 = vsyncpa [#allocation4], 0 }
   0x7   :  { %16 = vsyncpa [#allocation4 + $0x1], 0  ;;  %s853_s12 = smov 0   ;;  %s855_s13 = smov 0  }
   0x8   :  { %s857_s14 = smov 0   ;;  %s859_s15 = smov 0  }
   0x9   :  { %s861_s16 = smov 0   ;;  %s863_s17 = smov 0  }
   0xa   :  { %s865_s18 = smov 0   ;;  %s867_s19 = smov 0  }
   0xb LB: > { %1114 = sst [smem:[#allocation12_spill]] %s821_s18  ;;  %s892_s20 = sadd.s32 4294967295, %s825_s19   ;;  %s825_s19 = sphi %s867_s19, %s22_s19   ;;  %s821_s18 = sphi %s865_s18, %s1135_s18   ;;  %s817_s17 = sphi %s863_s17, %s1134_s17   ;;  %s813_s16 = sphi %s861_s16, %s1093_s16   ;;  %s809_s15 = sphi %s859_s15, %s1139_s15   ;;  %s805_s14 = sphi %s857_s14, %s1138_s14   ;;  %s801_s13 = sphi %s855_s13, %s1137_s13   ;;  %s797_s12 = sphi %s853_s12, %s1136_s12  }
   0xc   : > { %s500_s21 = sadd.s32 4294967294, %s825_s19   ;;  %s34_s22 = sadd.s32 1, %s821_s18 }
   0xd   : > { %p36_p0 = scmp.ge.s32.totalorder %s34_s22, 2  ;;  %p794_p1 = scmp.ne.s32.totalorder %s813_s16, 0 }
   0xe   : > { %p55_p2 = scmp.eq.s32.totalorder %s825_s19, 0  ;;  %p60_p3 = scmp.ne.s32.totalorder %s813_s16, %s809_s15 }
   0xf   : > { %s1141_s22 = smov (%p36_p0, %s34_s22), 0  ;;  %p61_p5 = scmp.eq.s32.totalorder %s892_s20, 0 }
  0x10   : > { %1115 = sst [smem:[#allocation13_spill]] %s1141_s22  ;;  %p901_p4 = por %p794_p1, %p55_p2 }
  0x11   : > { %p906_p6 = por %p61_p5, %p60_p3  ;;  %s134_s25 = ssub.s32 %s821_s18, %s1141_s22 }
  0x12   : > { %p135_p7 = scmp.eq.s32.totalorder %s134_s25, 0  ;;  %s137_s26 = sadd.s32 1, %s805_s14 }
  0x13   : > { %s1117_s24 = scalar_select %p906_p6, 1, 0 }
  0x14   : > { %s914_s27 = scalar_select %p135_p7, %s805_s14, %s137_s26  }
  0x15   : > { %p147_p8 = scmp.ne.s32.totalorder %s805_s14, %s801_s13  ;;  %p148_p9 = scmp.eq.s32.totalorder %s892_s20, 1 }
  0x16   : > { %1118 = sst [smem:[#allocation14_spill]] %s914_s27  ;;  %p153_p10 = scmp.ne.s32.totalorder %s801_s13, %s797_s12 }
  0x17   : > { %p154_p11 = scmp.eq.s32.totalorder %s500_s21, 1  ;;  %p921_p12 = por %p148_p9, %p147_p8 }
  0x18   : > { %p547_p1 = scmp.lt.s32.totalorder %s825_s19, 2  ;;  %s198_s4 = sand.u32 1, %s825_s19  }
  0x19   : > { %s1119_s28 = scalar_select %p921_p12, 1, 0 }
  0x1a   : > { %p926_p0 = por %p154_p11, %p153_p10  ;;  %p933_p2 = pnand %p547_p1, %p901_p4 }
  0x1b   : > { %s827_s5 = smov [#allocation5]   ;;  %s941_s7 = scalar_lea.sflag [#allocation6], %s198_s4 }
  0x1c   : > { %s1120_s29 = scalar_select %p926_p0, 1, 0 }
  0x1d   : > { %s1121_s30 = scalar_select %p933_p2, 1, 0 }
  0x1e   : > { %s212_s6 = sshll.u32 %s827_s5, 4  ;;  %s1122_s1 = sld [smem:[#allocation15_spill]]  ;;  %s938_s6 = int_to_ptr.vmem [resolvable:$true] %s212_s6 }
  0x1f   : > { %p951_p5 = pneg %p933_p2 }
  0x24   : > { %s628_s10 = scalar_lea.hbm %s1122_s1, 256 }
  0x25   : > { %p629_p4 = scmp.ne.s32.totalorder %s1122_s1, %s628_s10  ;;  %p635_p9 = scmp.lt.u32.totalorder %s628_s10, %s628_s10 }
  0x26   : > { %p637_p10 = scmp.lt.u32.totalorder %s628_s10, %s1122_s1 }
  0x27   : > { %p631_p7 = pnand %p951_p5, %p629_p4 }
  0x28   : > { %p638_p11 = por %p637_p10, %p635_p9 }
  0x29   : > { %p632_p8 = pneg %p631_p7 }
  0x2b   : > { %p639_p1 = pnand %p638_p11, %p632_p8 }
  0x2d   : > { %642 = shalt.err (!%p639_p1)
}
  0x2e   : > { %s643_s26 = scalar_lea.vmem %s938_s6, 256  ;;  %s650_s4 = scalar_lea.vmem %s938_s6, 512 }
  0x2f   : > { %p644_p13 = scmp.ne.s32.totalorder %s938_s6, %s643_s26  ;;  %p651_p4 = scmp.lt.s32.totalorder %s938_s6, %s938_s6 }
  0x30   : > { %p652_p7 = scmp.lt.s32.totalorder %s650_s4, %s643_s26 }
  0x31   : > { %p646_p3 = pnand %p644_p13, %p951_p5 }
  0x32   : > { %p653_p12 = por %p652_p7, %p651_p4 }
  0x33   : > { %p647_p0 = pneg %p646_p3 }
  0x35   : > { %p654_p6 = pnand %p653_p12, %p647_p0 }
  0x37   : > { %657 = shalt.err (!%p654_p6)
}
  0x38   : > { %s828_s5 = smov 128   ;;  %s829_s8 = smov 8  }
  0x39   : > { %539 = dma.hbm_to_vmem [thread:$0]  (!%p933_p2), %s1122_s1, 256, %s938_s6, %s941_s7, %s828_s5, %s828_s5, %s829_s8  }
  0x3a   : > { %p244_p13 = scmp.lt.s32.totalorder %s825_s19, 3  ;;  %p1124_p3 = scmp.ge.s32.totalorder %s825_s19, 1 }
  0x3b   : > { %s830_s15 = smov [#allocation2]   ;;  %s658_s4 = scalar_lea.hbm %s1103_s0, 256 }
  0x3c   : > { %p980_p12 = pnand %p1124_p3, %p244_p13  ;;  %s188_s23 = sshll.u32 %s830_s15, 4  ;;  %s189_s23 = int_to_ptr.vmem [resolvable:$true] %s188_s23 }
  0x3d   : > { %p659_p6 = scmp.ne.s32.totalorder %s1103_s0, %s658_s4  ;;  %p665_p9 = scmp.lt.u32.totalorder %s658_s4, %s658_s4 }
  0x3e   : > { %s1125_s11 = scalar_select %p980_p12, 1, 0 }
  0x3f   : > { %p661_p0 = pnand %p659_p6, %p951_p5  ;;  %p667_p10 = scmp.lt.u32.totalorder %s658_s4, %s1103_s0 }
  0x41   : > { %p662_p8 = pneg %p661_p0  ;;  %p668_p11 = por %p667_p10, %p665_p9 }
  0x43   : > { %p669_p1 = pnand %p668_p11, %p662_p8 }
  0x45   : > { %672 = shalt.err (!%p669_p1)
}
  0x46   : > { %s673_s10 = scalar_lea.vmem %s189_s23, 256  ;;  %s680_s15 = scalar_lea.vmem %s189_s23, 512 }
  0x47   : > { %p674_p4 = scmp.ne.s32.totalorder %s189_s23, %s673_s10  ;;  %p681_p3 = scmp.lt.s32.totalorder %s189_s23, %s189_s23 }
  0x48   : > { %p682_p12 = scmp.lt.s32.totalorder %s680_s15, %s673_s10 }
  0x49   : > { %p676_p7 = pnand %p674_p4, %p951_p5 }
  0x4a   : > { %p683_p2 = por %p682_p12, %p681_p3 }
  0x4b   : > { %p677_p13 = pneg %p676_p7 }
  0x4d   : > { %p684_p6 = pnand %p683_p2, %p677_p13 }
  0x4f   : > { %687 = shalt.err (!%p684_p6)
}
  0x50   : > { %p1126_p0 = scmp.ne.s32.totalorder %s1121_s30, 0  ;;  %s831_s25 = smov [#allocation7]  }
  0x51   : > { %s236_s26 = sshll.u32 %s831_s25, 4  ;;  %s688_s9 = scalar_lea.hbm %s1105_s2, 256  ;;  %s237_s26 = int_to_ptr.vmem [resolvable:$true] %s236_s26 }
  0x52   : > { %536 = dma.hbm_to_vmem [thread:$0]  (!%p1126_p0), %s1103_s0, 256, %s189_s23, [#allocation3], %s828_s5, %s828_s5, %s829_s8  }
  0x53   : > { %p689_p2 = scmp.ne.s32.totalorder %s1105_s2, %s688_s9  ;;  %p695_p9 = scmp.lt.u32.totalorder %s688_s9, %s688_s9 }
  0x54   : > { %p697_p10 = scmp.lt.u32.totalorder %s688_s9, %s1105_s2 }
  0x55   : > { %p691_p12 = pnand %p689_p2, %p951_p5 }
  0x56   : > { %p698_p11 = por %p697_p10, %p695_p9 }
  0x57   : > { %p692_p8 = pneg %p691_p12 }
  0x59   : > { %p699_p1 = pnand %p698_p11, %p692_p8 }
  0x5b   : > { %702 = shalt.err (!%p699_p1)
}
  0x5c   : > { %s703_s23 = scalar_lea.vmem %s237_s26, 256  ;;  %s710_s18 = scalar_lea.vmem %s237_s26, 512 }
  0x5d   : > { %p704_p4 = scmp.ne.s32.totalorder %s237_s26, %s703_s23  ;;  %p711_p3 = scmp.lt.s32.totalorder %s237_s26, %s237_s26 }
  0x5e   : > { %p712_p6 = scmp.lt.s32.totalorder %s710_s18, %s703_s23 }
  0x5f   : > { %p706_p7 = pnand %p704_p4, %p951_p5 }
  0x60   : > { %p713_p0 = por %p712_p6, %p711_p3 }
  0x61   : > { %p707_p13 = pneg %p706_p7 }
  0x63   : > { %p714_p2 = pnand %p713_p0, %p707_p13 }
  0x65   : > { %717 = shalt.err (!%p714_p2)
}
  0x66   : > { %p1127_p12 = scmp.ne.s32.totalorder %s1121_s30, 0  ;;  %p1128_p8 = scmp.ne.s32.totalorder %s1125_s11, 0 }
  0x67   : > { %s250_s21 = sand.u32 (!%p1128_p8), 1, %s813_s16   ;;  %p1129_p5 = scmp.ne.s32.totalorder (!%p1128_p8), %s1117_s24, 0 }
  0x68   : > { %542 = dma.hbm_to_vmem [thread:$0]  (!%p1127_p12), %s1105_s2, 256, %s237_s26, %s941_s7, %s828_s5, %s828_s5, %s829_s8  }
  0x69   : > { %248 = sbr.rel (%p1128_p8) target bundleno = 157 (0x9d), region = 32  ;;  %s1030_s22 = sshll.u32 (!%p1128_p8), %s250_s21, 4 }
  0x6a   : > { %s251_s25 = scalar_lea.sflag (!%p1128_p8), [#allocation3], %s250_s21  ;;  %s254_s4 = scalar_lea.vmem (!%p1128_p8), [#allocation2], %s1030_s22 }
  0x70   : > { %783 = dma.done.wait (%p1129_p5), %s251_s25, 256  }
  0x71   : > { %785 = vsyncadd (%p1129_p5), %s251_s25, 4294967040  ;;  %s259_s30 = sand.u32 1, %s892_s20   ;;  %s263_s5 = scalar_lea.vmem [#allocation5], %s1030_s22 }
  0x72   : > { %s260_s7 = scalar_lea.sflag [#allocation6], %s259_s30 }
  0x73   : > { %787 = dma.done.wait (%p1129_p5), %s260_s7, 512  }
  0x74   : > { %789 = vsyncadd (%p1129_p5), %s260_s7, 4294966784  ;;  %v343_v0 = vlaneseq  ;;  %s272_s8 = scalar_lea.vmem [#allocation7], %s1030_s22  ;;  %s517_s11 = sshll.u32 %s817_s17, 4  ;;  %v324_v12 = vld [vmem:[%s254_s4] sm:$0xff]  ;;  %v325_v14 = vld [vmem:[%s254_s4 + $0x8] sm:$0xff] }
  0x75   : > { %v322_v1 = vld [vmem:[%s272_s8] sm:$0xff]  ;;  %v323_v2 = vld [vmem:[%s272_s8 + $0x8] sm:$0xff]  ;;  %v349_v9 = vstv %s517_s11  ;;  %s302_s20 = sand.u32 1, %s801_s13   ;;  %s519_s26 = sshll.u32 %s817_s17, 7 }
  0x76   : > { %v344_v3 = vshrl.u32 %v343_v0, 7  ;;  %v330_v4 = vsub.f32 0.0, %v322_v1  ;;  %v331_v5 = vsub.f32 0.0, %v323_v2  ;;  %v326_v13 = vld [vmem:[%s263_s5] sm:$0xff]  ;;  %v327_v15 = vld [vmem:[%s263_s5 + $0x8] sm:$0xff]  ;;  %v347_v16 = vand.u32 127, %v343_v0  ;;  %s1050_s23 = scalar_lea.hbm %s1106_s3, %s519_s26 }
  0x77   : > { %v328_v18 = vsub.f32 %v324_v12, %v326_v13  ;;  %v329_v20 = vsub.f32 %v325_v14, %v327_v15  ;;  %s516_s24 = sshll.u32 %s302_s20, 3  ;;  %s365_s18 = scalar_lea.sflag [#allocation4], %s302_s20 }
  0x78   : > { %v332_v6 = vmul.f32 1.442695, %v330_v4  ;;  %v334_v7 = vmul.f32 1.442695, %v331_v5  ;;  %v345_v8 = vadd.s32 8, %v344_v3  ;;  %v350_v10 = vadd.s32 %v349_v9, %v344_v3  ;;  %s304_s6 = scalar_lea.vmem [#allocation8], %s516_s24 }
  0x79   : > { %s378_s9 = sshll.u32 %s304_s6, 4  ;;  %p1130_p9 = scmp.ne.s32.totalorder %s1119_s28, 0  ;;  %s1052_s9 = int_to_ptr.vmem [resolvable:$true] %s378_s9 }
  0x7a   : > { %624 = vpow2.f32 %v332_v6  ;;  %v351_v11 = vadd.s32 %v349_v9, %v345_v8  ;;  %v352_v17 = vmul.u32 128, %v350_v10  ;;  %s718_s1 = scalar_lea.vmem %s1052_s9, 128  ;;  %s832_s17 = smov [#allocation8]  }
  0x7b   : > { %626 = vpow2.f32 %v334_v7  ;;  %p719_p0 = scmp.ne.s32.totalorder %s1052_s9, %s718_s1  ;;  %s722_s27 = sshll.u32 %s832_s17, 4  ;;  %s723_s27 = int_to_ptr.vmem [resolvable:$false] %s722_s27 }
  0x7c   : > { %v353_v19 = vmul.u32 128, %v351_v11  ;;  %v354_v22 = vadd.s32 %v352_v17, %v347_v16  ;;  %s724_s21 = scalar_lea.vmem %s723_s27, 256  ;;  %p725_p1 = scmp.lt.s32.totalorder %s1052_s9, %s723_s27 }
  0x7d   : > { %p720_p10 = pnand %p719_p0, %p1130_p9  ;;  %p726_p4 = scmp.lt.s32.totalorder %s724_s21, %s718_s1 }
  0x7e   : > { %v355_v25 = vadd.s32 %v353_v19, %v347_v16  ;;  %vm356_vm0 = vcmp.lt.s32.totalorder %v354_v22, 2048 }
  0x7f   : > { %p721_p11 = pneg %p720_p10  ;;  %p727_p7 = por %p726_p4, %p725_p1 }
  0x80   : > { %vm357_vm1 = vcmp.lt.s32.totalorder %v355_v25, 2048 }
  0x81   : > { %p728_p13 = pnand %p727_p7, %p721_p11 }
  0x84   : > { %v625_v21 = vpop.eup %624 }
  0x85   : > { %v627_v23 = vpop.eup %626  ;;  %v336_v24 = vmul.f32 %v625_v21, %v328_v18 }
  0x86   : > { %v337_v26 = vmul.f32 %v627_v23, %v329_v20 }
  0x87   : > { %v338_v27 = vmul.f32 %v336_v24, %v328_v18 }
  0x88   : > { %v339_v28 = vmul.f32 %v337_v26, %v329_v20 }
  0x89   : > { %v340_v29 = vadd.f32 %v338_v27, %v322_v1 }
  0x8a   : > { %v341_v30 = vadd.f32 %v339_v28, %v323_v2 }
  0x8b   : > { %v358_v31 = vsel %vm356_vm0, %v340_v29, 0.0 }
  0x8c   : > { %v359_v32 = vsel %vm357_vm1, %v341_v30, 0.0 }
  0x8d   : > { %v361_v33 = vadd.f32 %v359_v32, %v358_v31 }
  0x8f   : > { %363 = vst [vmem:[%s304_s6] sm:$0xff] %v361_v33 }
  0x90   : > { %731 = shalt.err (!%p728_p13)
}
  0x91   : > { %s732_s22 = scalar_lea.hbm %s1050_s23, 128  ;;  %s736_s30 = scalar_lea.hbm %s1106_s3, 256 }
  0x92   : > { %p733_p3 = scmp.ne.s32.totalorder %s1050_s23, %s732_s22  ;;  %p737_p12 = scmp.lt.u32.totalorder %s1050_s23, %s1106_s3 }
  0x93   : > { %p738_p8 = scmp.lt.u32.totalorder %s736_s30, %s732_s22  ;;  %p740_p0 = scmp.lt.u32.totalorder %s732_s22, %s1050_s23 }
  0x94   : > { %p734_p6 = pnand %p733_p3, %p1130_p9 }
  0x95   : > { %p739_p5 = por %p738_p8, %p737_p12 }
  0x96   : > { %p735_p2 = pneg %p734_p6 }
  0x97   : > { %p741_p10 = por %p740_p0, %p739_p5 }
  0x99   : > { %p742_p11 = pnand %p741_p10, %p735_p2 }
  0x9b   : > { %745 = shalt.err (!%p742_p11)
}
  0x9c   : > { %531 = dma.vmem_to_hbm [thread:$0]  (%p1130_p9), %s1052_s9, 128, %s1050_s23, %s365_s18  }
  0x9d PF: > { %s390_s8 = sand.u32 1, %s797_s12   ;;  %p1131_p1 = scmp.ne.s32.totalorder %s1120_s29, 0 }
  0x9e   : > { %p1132_p4 = scmp.ge.s32.totalorder %s825_s19, 2  ;;  %s391_s11 = scalar_lea.sflag [#allocation4], %s390_s8 }
  0xa0   : > { %p544_p7 = pnand %p1132_p4, %p1131_p1 }
  0xa2   : > { %791 = dma.done.wait (!%p544_p7), %s391_s11, 128  }
  0xa3   : > { %793 = vsyncadd (!%p544_p7), %s391_s11, 4294967168  ;;  %s22_s19 = sadd.s32 1, %s825_s19   ;;  %s1133_s28 = sld [smem:[#allocation14_spill]] }
  0xa4   : > { %p19_p13 = scmp.ge.s32.totalorder %s22_s19, 4   ;;  %s1134_s17 = sld [smem:[#allocation12_spill]] }
  0xa5   : > { %s1135_s18 = sld [smem:[#allocation13_spill]]  ;;  %s1136_s12 = smov %s801_s13 }
  0xa6   : > { %s1137_s13 = smov %s805_s14  ;;  %s1139_s15 = smov %s813_s16 }
  0xa7   : > { %s1093_s16 = smov 0   ;;  %21 = sbr.rel (!%p19_p13) target bundleno = 11 (0xb), region = 105 }
  0xa9   : > { %s1138_s14 = smov %s1133_s28 }
  0xae   :  { %396 = vsyncpa [#allocation3], 1 }
  0xaf   :  { %398 = vsyncpa [#allocation3 + $0x1], 1 }
  0xb0   :  { %399 = vsyncpa [#allocation6], 1 }
  0xb1   :  { %401 = vsyncpa [#allocation6 + $0x1], 1 }
  0xb2   :  { %402 = vsyncpa [#allocation4], 1 }
  0xb3   :  { %404 = vsyncpa [#allocation4 + $0x1], 1 }

</bundles_post_ra>
